<compile_context>
chip_gen: v5e
topology: v5e:2x2
jax: 0.10.0
libtpu: 0.0.40
codegen_flags: <defaults>
</compile_context>

<pallas_src>
import functools

import jax
import jax.numpy as jnp
import numpy as np
from jax.experimental import pallas as pl
from jax.experimental.pallas import tpu as pltpu


def _round_up(x, m):
    return -(-x // m) * m


def _divisors(n):
    ds = set()
    i = 1
    while i * i <= n:
        if n % i == 0:
            ds.add(i)
            ds.add(n // i)
        i += 1
    return sorted(ds)


def _vmem_estimate(tl, tlh, cin_p, cout, nh, mdim, ks, mxu_bytes):
    """Rough per-step VMEM footprint (double-buffered I/O + scratch + intermediates)."""
    k2 = ks * ks * cin_p
    est = 0
    est += 2 * cin_p * tl * 4                      # main input tile (dbl buffered)
    est += 2 * cin_p * tlh * 4                     # halo block
    est += 2 * cout * tl * 4                       # output tile
    est += 2 * ks * tl * 4                         # resident column masks
    est += k2 * tl * mxu_bytes                     # stacked slab scratch
    est += nh * mdim * tl * (4 + mxu_bytes)        # scores (f32) + probs (mxu dtype)
    est += 2 * cout * tl * 4                       # projection intermediate
    est += 2 * (nh * mdim * k2 + cout * nh * mdim + cout) * 4   # resident weights
    return est + (1 << 20)                         # slack


def _choose_tiling(H, W, ks, batch, cin_p, cout, nh, mdim, mxu_bytes,
                   target_lanes, min_steps, vmem_budget, tile_rows=None):
    """Pick (tile_rows, tile_lanes, halo_lanes).

    Constraints: tile_rows | H;  TL = tile_rows*W multiple of 128;  TLH is the
    smallest multiple-of-128 divisor of TL that covers the (ks-1)-row halo; the
    per-step VMEM estimate fits the budget.  Preference: largest TL <= target_lanes,
    then shrink while keeping >= min_steps total grid steps (megacore pipelining).
    """
    halo = (ks - 1) * (W + 1)
    rows_list = [tile_rows] if tile_rows is not None else list(range(1, H + 1))
    cands = []
    for th in rows_list:
        if th <= 0 or H % th:
            continue
        tl = th * W
        if tl % 128 or tl < halo:
            continue
        tlh = min(d for d in _divisors(tl) if d % 128 == 0 and d >= halo)
        if _vmem_estimate(tl, tlh, cin_p, cout, nh, mdim, ks, mxu_bytes) > vmem_budget:
            continue
        cands.append((th, tl, tlh))
    if not cands:
        raise ValueError(
            f"no valid row tiling for H={H}, W={W}, ks={ks} "
            f"(tile_rows={tile_rows}, vmem_budget={vmem_budget})")
    if tile_rows is not None:
        return cands[0]
    under = [c for c in cands if c[1] <= target_lanes]
    pick = max(under, key=lambda c: c[1]) if under else min(cands, key=lambda c: c[1])
    # Keep >= min_steps grid steps when a smaller valid tile exists (>=2 steps per
    # TensorCore on v7x so the DMA prologue/epilogue overlaps with compute).
    while batch * (H // pick[0]) < min_steps:
        smaller = [c for c in cands if c[0] < pick[0]]
        if not smaller:
            break
        pick = max(smaller, key=lambda c: c[1])
    return pick


def _build_fused_weights(params, *, n_heads, key_dim, memory_dim, head_dim,
                         out_dim, kernel_size, cin, cin_p, mxu_dtype):
    """Fold 1x1 conv (+bias as ones-channel), unfold scatter and key into per-offset
    matrices, flattened to one (NH*M, ks^2*cin_p) MXU operand; fold memory^T and the
    optional to_out 1x1 conv into one (cout, NH*M) projection."""
    ks = kernel_size
    NH, M, D = n_heads, memory_dim, head_dim
    K = key_dim * ks * ks
    Cmk = NH * key_dim
    cin1 = cin + 1

    key = jnp.asarray(params["key"], jnp.float32)                          # (NH, K, M)
    mem_t = jnp.transpose(jnp.asarray(params["memory"], jnp.float32), (0, 2, 1))  # (NH, D, M)
    w_mk = jnp.asarray(params["w_mem_key"], jnp.float32)                   # (Cmk, Cin)
    b_mk = jnp.asarray(params["b_mem_key"], jnp.float32)                   # (Cmk,)

    # 1x1 conv with the bias folded in as an extra (all-ones) input channel.
    w_aug = jnp.concatenate([w_mk, b_mk[:, None]], axis=1)                 # (Cmk, cin1)

    # Selection tensor reproducing rearrange('b (c m) l -> b m c l', m=NH) on the
    # unfold channel axis (conv channel slowest, then ki, kj; heads fastest factor).
    sel = np.zeros((NH, ks * ks, Cmk, K), np.float32)
    for m in range(NH):
        for c in range(K):
            flat = c * NH + m
            sel[m, flat % (ks * ks), flat // (ks * ks), c] = 1.0

    # B[n, kk] = (key[n] scattered over (offset, conv channel)) @ [W_mk | b_mk]
    ball = jnp.einsum("nci,nkoc,od->nkid", key, jnp.asarray(sel), w_aug)   # (NH,ks2,M,cin1)
    ball = jnp.transpose(ball, (1, 0, 2, 3)).reshape(ks * ks, NH * M, cin1)
    ball = jnp.pad(ball, ((0, 0), (0, 0), (0, cin_p - cin1)))              # zero dummy chans
    ball_flat = jnp.transpose(ball, (1, 0, 2)).reshape(NH * M, ks * ks * cin_p)

    # Fold memory^T (and the optional to_out 1x1 conv) into one output projection.
    if out_dim != D * NH:
        w_out = jnp.asarray(params["w_out"], jnp.float32)
        b_out = jnp.asarray(params["b_out"], jnp.float32)
        proj = jnp.concatenate(
            [w_out[:, m * D:(m + 1) * D] @ mem_t[m] for m in range(NH)], axis=1)
        bias = b_out[:, None]
        cout = out_dim
    else:
        rows = []
        for m in range(NH):
            blk = [jnp.zeros((D, M), jnp.float32) for _ in range(NH)]
            blk[m] = mem_t[m]
            rows.append(jnp.concatenate(blk, axis=1))
        proj = jnp.concatenate(rows, axis=0)                               # (NH*D, NH*M)
        bias = jnp.zeros((NH * D, 1), jnp.float32)
        cout = NH * D
    return ball_flat.astype(mxu_dtype), proj.astype(mxu_dtype), bias, cout


def _make_kernel(*, n_heads, memory_dim, cout, cin_p, tl, width, ks, p_lo, mxu_dtype):
    nh, mdim = n_heads, memory_dim

    def kernel(xm_ref, xh_ref, cm_ref, b_ref, proj_ref, bias_ref, o_ref, slab_ref):
        # ---- 1. assemble the ks^2 shifted slabs: (ks^2*cin_p, TL) scratch ---------
        # Built straight from the main/halo blocks; host-precomputed column masks
        # (ZeroPad2d in W) are fused into the writes.  cin_p is 8-aligned so every
        # sublane block offset is aligned.
        for ki in range(ks):
            for kj in range(ks):
                kk = ki * ks + kj
                off = ki * width + kj
                dj = kj - p_lo
                r0, r1 = kk * cin_p, (kk + 1) * cin_p
                if off == 0:
                    part = xm_ref[0]
                    if dj != 0:
                        part = part * cm_ref[kj:kj + 1, :]
                    slab_ref[r0:r1, :] = part.astype(mxu_dtype)
                else:
                    lead = tl - off
                    if lead > 0:
                        head = xm_ref[0, :, off:]
                        if dj != 0:
                            head = head * cm_ref[kj:kj + 1, :lead]
                        slab_ref[r0:r1, :lead] = head.astype(mxu_dtype)
                    tail = xh_ref[0, :, :off]
                    if dj != 0:
                        tail = tail * cm_ref[kj:kj + 1, lead:]
                    slab_ref[r0:r1, lead:] = tail.astype(mxu_dtype)

        # ---- 2. key scores for all heads / offsets in ONE MXU pass ----------------
        s = jnp.dot(b_ref[...], slab_ref[...], preferred_element_type=jnp.float32)

        # ---- 3. per-head softmax over the memory dim (f32 VPU/EUP math) -----------
        probs = []
        for m in range(nh):
            sm = s[m * mdim:(m + 1) * mdim, :]
            sm = sm - jnp.max(sm, axis=0, keepdims=True)
            e = jnp.exp(sm)
            denom = jnp.sum(e, axis=0, keepdims=True)
            inv = pl.reciprocal(denom, approx=True)       # EUP slot
            inv = inv * (2.0 - denom * inv)               # cheap: (1, TL) only
            probs.append((e * inv).astype(mxu_dtype))
        p_all = probs[0] if nh == 1 else jnp.concatenate(probs, axis=0)

        # ---- 4. fused memory^T (+ optional to_out) projection: ONE dot ------------
        y = jnp.dot(proj_ref[...], p_all, preferred_element_type=jnp.float32)
        o_ref[0] = (y + bias_ref[...]).astype(o_ref.dtype)

    return kernel


def key_conv_memory_multihead(x, params, *, n_heads, key_dim, memory_dim,
                              head_dim, out_dim, kernel_size, tile_rows=None,
                              mxu_dtype=jnp.bfloat16, target_lanes=16384,
                              min_grid_steps=4):
    B, Cin, H, W = x.shape
    ks = kernel_size
    assert ks >= 2, "kernel_size >= 2 required (matches the torch module's pad/unfold)"
    L = H * W
    p_lo, p_hi = ks // 2, ks % 2
    cin1 = Cin + 1
    cin_p = _round_up(cin1, 8)                    # 8-aligned channel count
    mxu_bytes = np.dtype(mxu_dtype).itemsize

    # Per-generation VMEM budget (64 MiB on v7x vs 128 MiB on v5e/v6e).
    try:
        vmem_cap = int(pltpu.get_tpu_info().vmem_capacity_bytes)
    except Exception:
        vmem_cap = 64 * 1024 * 1024
    vmem_budget = min(int(vmem_cap * 0.7), 100 * 1024 * 1024)

    ball_flat, proj, bias, cout = _build_fused_weights(
        params, n_heads=n_heads, key_dim=key_dim, memory_dim=memory_dim,
        head_dim=head_dim, out_dim=out_dim, kernel_size=kernel_size,
        cin=Cin, cin_p=cin_p, mxu_dtype=mxu_dtype)

    th, tl, tlh = _choose_tiling(H, W, ks, B, cin_p, cout, n_heads, memory_dim,
                                 mxu_bytes, target_lanes, min_grid_steps,
                                 vmem_budget, tile_rows)
    n_tiles = H // th
    blocks_per_tile = tl // tlh

    # Wrapper-side input prep (O(input size) only): augment channels (+ones carrying
    # the conv bias, +zeros up to the 8-aligned count), zero-pad rows, flatten, and
    # zero-pad the flat axis so every tile's halo window is in bounds.
    xf32 = x.astype(jnp.float32)
    ones = jnp.ones((B, 1, H, W), jnp.float32)
    zpad = jnp.zeros((B, cin_p - cin1, H, W), jnp.float32)
    xa = jnp.concatenate([xf32, ones, zpad], axis=1)
    xa = jnp.pad(xa, ((0, 0), (0, 0), (p_lo, p_hi), (0, 0)))
    xflat = xa.reshape(B, cin_p, (H + ks - 1) * W)
    xflat = jnp.pad(xflat, ((0, 0), (0, 0), (p_lo, 0)))
    ltot = (n_tiles + 1) * tl
    xflat = jnp.pad(xflat, ((0, 0), (0, 0), (0, ltot - xflat.shape[-1])))

    # Host-precomputed column-validity masks (one row per kj column shift).
    col = np.arange(tl) % W
    cmask = np.stack(
        [((col + (kj - p_lo) >= 0) & (col + (kj - p_lo) < W)).astype(np.float32)
         for kj in range(ks)], axis=0)
    cmask = jnp.asarray(cmask)

    k2 = ks * ks * cin_p
    est = _vmem_estimate(tl, tlh, cin_p, cout, n_heads, memory_dim, ks, mxu_bytes)
    vmem_limit = max(32 * 1024 * 1024,
                     min(int(vmem_cap * 0.85), est + (8 << 20)))

    kernel = _make_kernel(n_heads=n_heads, memory_dim=memory_dim, cout=cout,
                          cin_p=cin_p, tl=tl, width=W, ks=ks, p_lo=p_lo,
                          mxu_dtype=mxu_dtype)

    out = pl.pallas_call(
        kernel,
        out_shape=jax.ShapeDtypeStruct((B, cout, L), x.dtype),
        grid_spec=pltpu.PrefetchScalarGridSpec(
            num_scalar_prefetch=0,
            grid=(B, n_tiles),
            in_specs=[
                # main lane-dense input tile
                pl.BlockSpec((1, cin_p, tl), lambda b, t: (b, 0, t)),
                # small halo block right after the tile (same array, auto-pipelined)
                pl.BlockSpec((1, cin_p, tlh),
                             lambda b, t: (b, 0, (t + 1) * blocks_per_tile)),
                # resident column masks, fused key*conv matrix, projection, bias
                pl.BlockSpec((ks, tl), lambda b, t: (0, 0)),
                pl.BlockSpec((n_heads * memory_dim, k2), lambda b, t: (0, 0)),
                pl.BlockSpec((cout, n_heads * memory_dim), lambda b, t: (0, 0)),
                pl.BlockSpec((cout, 1), lambda b, t: (0, 0)),
            ],
            out_specs=pl.BlockSpec((1, cout, tl), lambda b, t: (b, 0, t)),
            scratch_shapes=[pltpu.VMEM((k2, tl), mxu_dtype)],
        ),
        compiler_params=pltpu.CompilerParams(
            dimension_semantics=("parallel", "parallel"),
            vmem_limit_bytes=int(vmem_limit),
        ),
    )(xflat, xflat, cmask, ball_flat, proj, bias)
    return out.reshape(B, cout, H, W)


# ----------------------------------------------------------------------------
# Pure-JAX reference (straightforward module math) used to validate the kernel.
# ----------------------------------------------------------------------------
def _pad_unfold(x_nchw, ks):
    B, C, H, W = x_nchw.shape
    p_lo, p_hi = ks // 2, ks % 2
    xp = jnp.pad(x_nchw, ((0, 0), (0, 0), (p_lo, p_hi), (p_lo, p_hi)))
    cols = [xp[:, :, ki:ki + H, kj:kj + W] for ki in range(ks) for kj in range(ks)]
    patches = jnp.stack(cols, axis=2)                 # (B, C, ks*ks, H, W)
    return patches.reshape(B, C * ks * ks, H * W)


def _reference(x, params, *, n_heads, key_dim, memory_dim, head_dim, out_dim,
               kernel_size):
    B, C, H, W = x.shape
    L = H * W
    ks = kernel_size
    K = key_dim * ks * ks
    mk = jnp.einsum("oc,bcl->bol", params["w_mem_key"], x.reshape(B, C, L)) \
        + params["b_mem_key"][None, :, None]
    unf = _pad_unfold(mk.reshape(B, n_heads * key_dim, H, W), ks)
    unf = jnp.transpose(unf.reshape(B, K, n_heads, L), (0, 2, 1, 3))
    s = jnp.einsum("nki,bnkl->bnil", params["key"], unf)
    s = jax.nn.softmax(s, axis=2)
    o = jnp.einsum("nki,bnkl->bnil", params["memory"], s)
    o = o.reshape(B, n_heads * head_dim, L)
    if out_dim != head_dim * n_heads:
        o = jnp.einsum("oc,bcl->bol", params["w_out"], o) + params["b_out"][None, :, None]
    return o.reshape(B, -1, H, W)


if __name__ == "__main__":
    in_dim, n_heads, key_dim = 4, 2, 4
    memory_dim, head_dim, out_dim, kernel_size = 8, 8, 8, 3   # out_dim != NH*D -> to_out

    rng = jax.random.PRNGKey(0)
    k1, k2, k3, k4, k5, k6, k7 = jax.random.split(rng, 7)
    K = key_dim * kernel_size * kernel_size
    params = {
        "key": jax.random.uniform(k1, (n_heads, K, memory_dim), jnp.float32),
        "memory": jax.random.uniform(k2, (n_heads, memory_dim, head_dim),
                                     jnp.float32) * 2.0 - 1.0,
        "w_mem_key": jax.random.uniform(k3, (n_heads * key_dim, in_dim), jnp.float32,
                                        minval=-0.5, maxval=0.5),
        "b_mem_key": jax.random.uniform(k4, (n_heads * key_dim,), jnp.float32,
                                        minval=-0.1, maxval=0.1),
        "w_out": jax.random.uniform(k5, (out_dim, n_heads * head_dim), jnp.float32,
                                    minval=-0.5, maxval=0.5),
        "b_out": jax.random.uniform(k6, (out_dim,), jnp.float32, minval=-0.1, maxval=0.1),
    }
    x = jax.random.normal(k7, (2, in_dim, 16, 16), jnp.float32)   # NCHW

    common = dict(n_heads=n_heads, key_dim=key_dim, memory_dim=memory_dim,
                  head_dim=head_dim, out_dim=out_dim, kernel_size=kernel_size)
    ref = _reference(x, params, **common)

    # 1) exact-math path (f32 MXU operands), explicit 2-row-tile config: exercises the
    #    cross-tile halo and the to_out folding.
    out_f32 = jax.block_until_ready(
        jax.jit(functools.partial(key_conv_memory_multihead, tile_rows=8,
                                  mxu_dtype=jnp.float32, **common))(x, params))
    np.testing.assert_allclose(np.asarray(out_f32), np.asarray(ref), rtol=2e-3, atol=2e-3)
    assert out_f32.shape == (2, out_dim, 16, 16)

    # 2) exact-math path, one tile per image (halo lies entirely in the zero padding).
    out_f32s = jax.block_until_ready(
        jax.jit(functools.partial(key_conv_memory_multihead, tile_rows=16,
                                  mxu_dtype=jnp.float32, **common))(x, params))
    np.testing.assert_allclose(np.asarray(out_f32s), np.asarray(ref), rtol=2e-3, atol=2e-3)

    # 3) no-to_out path (out_dim == NH*D): exercises the block-diagonal projection.
    common2 = dict(common, out_dim=n_heads * head_dim)
    ref2 = _reference(x, params, **common2)
    out2 = jax.block_until_ready(
        jax.jit(functools.partial(key_conv_memory_multihead, tile_rows=8,
                                  mxu_dtype=jnp.float32, **common2))(x, params))
    np.testing.assert_allclose(np.asarray(out2), np.asarray(ref2), rtol=2e-3, atol=2e-3)
    assert out2.shape == (2, n_heads * head_dim, 16, 16)

    # 4) default fast path: auto tiling (>=4 grid steps here) + bf16 MXU operands with
    #    f32 accumulation; looser tolerance accounts for bf16 operand rounding.
    out_fast = jax.block_until_ready(
        jax.jit(functools.partial(key_conv_memory_multihead, **common))(x, params))
    np.testing.assert_allclose(np.asarray(out_fast), np.asarray(ref), rtol=5e-2, atol=5e-2)

    print("KERNEL_OK")
</pallas_src>

<mosaic_0001>
module attributes {stable_mosaic.version = 11 : i64} {
  func.func @kernel(%arg0: i32, %arg1: i32, %arg2: memref<1x8x128xf32, #tpu.memory_space<vmem>>, %arg3: memref<1x8x128xf32, #tpu.memory_space<vmem>>, %arg4: memref<3x128xf32, #tpu.memory_space<vmem>>, %arg5: memref<16x72xf32, #tpu.memory_space<vmem>>, %arg6: memref<8x16xf32, #tpu.memory_space<vmem>>, %arg7: memref<8x1xf32, #tpu.memory_space<vmem>>, %arg8: memref<1x8x128xf32, #tpu.memory_space<vmem>>, %arg9: memref<72x128xf32, #tpu.memory_space<vmem>>) attributes {dimension_semantics = [#tpu.dimension_semantics<parallel>, #tpu.dimension_semantics<parallel>], iteration_bounds = array<i64: 2, 2>, scalar_prefetch = 0 : i64, scratch_operands = 1 : i64, tpu.core_type = #tpu.core_type<tc>, window_params = [{transform_indices = @transform_0, window_bounds = array<i64: 1, 8, 128>}, {transform_indices = @transform_1, window_bounds = array<i64: 1, 8, 128>}, {pipeline_mode = #tpu.pipeline_mode<synchronous>, transform_indices = @transform_2, window_bounds = array<i64: 3, 128>}, {pipeline_mode = #tpu.pipeline_mode<synchronous>, transform_indices = @transform_3, window_bounds = array<i64: 16, 72>}, {pipeline_mode = #tpu.pipeline_mode<synchronous>, transform_indices = @transform_4, window_bounds = array<i64: 8, 16>}, {pipeline_mode = #tpu.pipeline_mode<synchronous>, transform_indices = @transform_5, window_bounds = array<i64: 8, 1>}, {transform_indices = @transform_6, window_bounds = array<i64: 1, 8, 128>}]} {
    %c0 = arith.constant 0 : index
    %c0_0 = arith.constant 0 : index
    %c0_1 = arith.constant 0 : index
    %0 = vector.load %arg2[%c0, %c0_0, %c0_1] : memref<1x8x128xf32, #tpu.memory_space<vmem>>, vector<1x8x128xf32>
    %1 = vector.shape_cast %0 : vector<1x8x128xf32> to vector<8x128xf32>
    %c0_2 = arith.constant 0 : index
    %c0_3 = arith.constant 0 : index
    %2 = vector.load %arg4[%c0_2, %c0_3] : memref<3x128xf32, #tpu.memory_space<vmem>>, vector<1x128xf32>
    %3 = vector.broadcast %2 : vector<1x128xf32> to vector<8x128xf32>
    %4 = arith.mulf %1, %3 : vector<8x128xf32>
    %c0_4 = arith.constant 0 : index
    %c0_5 = arith.constant 0 : index
    %5 = vector.load %arg9[%c0_4, %c0_5] : memref<72x128xf32, #tpu.memory_space<vmem>>, vector<8x128xf32>
    tpu.vector_store %arg9[%c0_4, %c0_5], %4 {strides = array<i32>} : memref<72x128xf32, #tpu.memory_space<vmem>>, vector<8x128xf32>,
    %c0_6 = arith.constant 0 : index
    %c0_7 = arith.constant 0 : index
    %c1 = arith.constant 1 : index
    %6 = vector.load %arg2[%c0_6, %c0_7, %c1] : memref<1x8x128xf32, #tpu.memory_space<vmem>>, vector<1x8x127xf32>
    %7 = vector.shape_cast %6 : vector<1x8x127xf32> to vector<8x127xf32>
    %c8 = arith.constant 8 : index
    %c0_8 = arith.constant 0 : index
    %8 = vector.load %arg9[%c8, %c0_8] : memref<72x128xf32, #tpu.memory_space<vmem>>, vector<8x127xf32>
    tpu.vector_store %arg9[%c8, %c0_8], %7 {strides = array<i32>} : memref<72x128xf32, #tpu.memory_space<vmem>>, vector<8x127xf32>,
    %c0_9 = arith.constant 0 : index
    %c0_10 = arith.constant 0 : index
    %c0_11 = arith.constant 0 : index
    %9 = vector.load %arg3[%c0_9, %c0_10, %c0_11] : memref<1x8x128xf32, #tpu.memory_space<vmem>>, vector<1x8x1xf32>
    %10 = vector.shape_cast %9 : vector<1x8x1xf32> to vector<8x1xf32>
    %c8_12 = arith.constant 8 : index
    %c127 = arith.constant 127 : index
    %11 = vector.load %arg9[%c8_12, %c127] : memref<72x128xf32, #tpu.memory_space<vmem>>, vector<8x1xf32>
    tpu.vector_store %arg9[%c8_12, %c127], %10 {strides = array<i32>} : memref<72x128xf32, #tpu.memory_space<vmem>>, vector<8x1xf32>,
    %c0_13 = arith.constant 0 : index
    %c0_14 = arith.constant 0 : index
    %c2 = arith.constant 2 : index
    %12 = vector.load %arg2[%c0_13, %c0_14, %c2] : memref<1x8x128xf32, #tpu.memory_space<vmem>>, vector<1x8x126xf32>
    %13 = vector.shape_cast %12 : vector<1x8x126xf32> to vector<8x126xf32>
    %c2_15 = arith.constant 2 : index
    %c0_16 = arith.constant 0 : index
    %14 = vector.load %arg4[%c2_15, %c0_16] : memref<3x128xf32, #tpu.memory_space<vmem>>, vector<1x126xf32>
    %15 = vector.broadcast %14 : vector<1x126xf32> to vector<8x126xf32>
    %16 = arith.mulf %13, %15 : vector<8x126xf32>
    %c16 = arith.constant 16 : index
    %c0_17 = arith.constant 0 : index
    %17 = vector.load %arg9[%c16, %c0_17] : memref<72x128xf32, #tpu.memory_space<vmem>>, vector<8x126xf32>
    tpu.vector_store %arg9[%c16, %c0_17], %16 {strides = array<i32>} : memref<72x128xf32, #tpu.memory_space<vmem>>, vector<8x126xf32>,
    %c0_18 = arith.constant 0 : index
    %c0_19 = arith.constant 0 : index
    %c0_20 = arith.constant 0 : index
    %18 = vector.load %arg3[%c0_18, %c0_19, %c0_20] : memref<1x8x128xf32, #tpu.memory_space<vmem>>, vector<1x8x2xf32>
    %19 = vector.shape_cast %18 : vector<1x8x2xf32> to vector<8x2xf32>
    %c2_21 = arith.constant 2 : index
    %c126 = arith.constant 126 : index
    %20 = vector.load %arg4[%c2_21, %c126] : memref<3x128xf32, #tpu.memory_space<vmem>>, vector<1x2xf32>
    %21 = vector.broadcast %20 : vector<1x2xf32> to vector<8x2xf32>
    %22 = arith.mulf %19, %21 : vector<8x2xf32>
    %c16_22 = arith.constant 16 : index
    %c126_23 = arith.constant 126 : index
    %23 = vector.load %arg9[%c16_22, %c126_23] : memref<72x128xf32, #tpu.memory_space<vmem>>, vector<8x2xf32>
    tpu.vector_store %arg9[%c16_22, %c126_23], %22 {strides = array<i32>} : memref<72x128xf32, #tpu.memory_space<vmem>>, vector<8x2xf32>,
    %c0_24 = arith.constant 0 : index
    %c0_25 = arith.constant 0 : index
    %c16_26 = arith.constant 16 : index
    %24 = vector.load %arg2[%c0_24, %c0_25, %c16_26] : memref<1x8x128xf32, #tpu.memory_space<vmem>>, vector<1x8x112xf32>
    %25 = vector.shape_cast %24 : vector<1x8x112xf32> to vector<8x112xf32>
    %c0_27 = arith.constant 0 : index
    %c0_28 = arith.constant 0 : index
    %26 = vector.load %arg4[%c0_27, %c0_28] : memref<3x128xf32, #tpu.memory_space<vmem>>, vector<1x112xf32>
    %27 = vector.broadcast %26 : vector<1x112xf32> to vector<8x112xf32>
    %28 = arith.mulf %25, %27 : vector<8x112xf32>
    %c24 = arith.constant 24 : index
    %c0_29 = arith.constant 0 : index
    %29 = vector.load %arg9[%c24, %c0_29] : memref<72x128xf32, #tpu.memory_space<vmem>>, vector<8x112xf32>
    tpu.vector_store %arg9[%c24, %c0_29], %28 {strides = array<i32>} : memref<72x128xf32, #tpu.memory_space<vmem>>, vector<8x112xf32>,
    %c0_30 = arith.constant 0 : index
    %c0_31 = arith.constant 0 : index
    %c0_32 = arith.constant 0 : index
    %30 = vector.load %arg3[%c0_30, %c0_31, %c0_32] : memref<1x8x128xf32, #tpu.memory_space<vmem>>, vector<1x8x16xf32>
    %31 = vector.shape_cast %30 : vector<1x8x16xf32> to vector<8x16xf32>
    %c0_33 = arith.constant 0 : index
    %c112 = arith.constant 112 : index
    %32 = vector.load %arg4[%c0_33, %c112] : memref<3x128xf32, #tpu.memory_space<vmem>>, vector<1x16xf32>
    %33 = vector.broadcast %32 : vector<1x16xf32> to vector<8x16xf32>
    %34 = arith.mulf %31, %33 : vector<8x16xf32>
    %c24_34 = arith.constant 24 : index
    %c112_35 = arith.constant 112 : index
    %35 = vector.load %arg9[%c24_34, %c112_35] : memref<72x128xf32, #tpu.memory_space<vmem>>, vector<8x16xf32>
    tpu.vector_store %arg9[%c24_34, %c112_35], %34 {strides = array<i32>} : memref<72x128xf32, #tpu.memory_space<vmem>>, vector<8x16xf32>,
    %c0_36 = arith.constant 0 : index
    %c0_37 = arith.constant 0 : index
    %c17 = arith.constant 17 : index
    %36 = vector.load %arg2[%c0_36, %c0_37, %c17] : memref<1x8x128xf32, #tpu.memory_space<vmem>>, vector<1x8x111xf32>
    %37 = vector.shape_cast %36 : vector<1x8x111xf32> to vector<8x111xf32>
    %c32 = arith.constant 32 : index
    %c0_38 = arith.constant 0 : index
    %38 = vector.load %arg9[%c32, %c0_38] : memref<72x128xf32, #tpu.memory_space<vmem>>, vector<8x111xf32>
    tpu.vector_store %arg9[%c32, %c0_38], %37 {strides = array<i32>} : memref<72x128xf32, #tpu.memory_space<vmem>>, vector<8x111xf32>,
    %c0_39 = arith.constant 0 : index
    %c0_40 = arith.constant 0 : index
    %c0_41 = arith.constant 0 : index
    %39 = vector.load %arg3[%c0_39, %c0_40, %c0_41] : memref<1x8x128xf32, #tpu.memory_space<vmem>>, vector<1x8x17xf32>
    %40 = vector.shape_cast %39 : vector<1x8x17xf32> to vector<8x17xf32>
    %c32_42 = arith.constant 32 : index
    %c111 = arith.constant 111 : index
    %41 = vector.load %arg9[%c32_42, %c111] : memref<72x128xf32, #tpu.memory_space<vmem>>, vector<8x17xf32>
    tpu.vector_store %arg9[%c32_42, %c111], %40 {strides = array<i32>} : memref<72x128xf32, #tpu.memory_space<vmem>>, vector<8x17xf32>,
    %c0_43 = arith.constant 0 : index
    %c0_44 = arith.constant 0 : index
    %c18 = arith.constant 18 : index
    %42 = vector.load %arg2[%c0_43, %c0_44, %c18] : memref<1x8x128xf32, #tpu.memory_space<vmem>>, vector<1x8x110xf32>
    %43 = vector.shape_cast %42 : vector<1x8x110xf32> to vector<8x110xf32>
    %c2_45 = arith.constant 2 : index
    %c0_46 = arith.constant 0 : index
    %44 = vector.load %arg4[%c2_45, %c0_46] : memref<3x128xf32, #tpu.memory_space<vmem>>, vector<1x110xf32>
    %45 = vector.broadcast %44 : vector<1x110xf32> to vector<8x110xf32>
    %46 = arith.mulf %43, %45 : vector<8x110xf32>
    %c40 = arith.constant 40 : index
    %c0_47 = arith.constant 0 : index
    %47 = vector.load %arg9[%c40, %c0_47] : memref<72x128xf32, #tpu.memory_space<vmem>>, vector<8x110xf32>
    tpu.vector_store %arg9[%c40, %c0_47], %46 {strides = array<i32>} : memref<72x128xf32, #tpu.memory_space<vmem>>, vector<8x110xf32>,
    %c0_48 = arith.constant 0 : index
    %c0_49 = arith.constant 0 : index
    %c0_50 = arith.constant 0 : index
    %48 = vector.load %arg3[%c0_48, %c0_49, %c0_50] : memref<1x8x128xf32, #tpu.memory_space<vmem>>, vector<1x8x18xf32>
    %49 = vector.shape_cast %48 : vector<1x8x18xf32> to vector<8x18xf32>
    %c2_51 = arith.constant 2 : index
    %c110 = arith.constant 110 : index
    %50 = vector.load %arg4[%c2_51, %c110] : memref<3x128xf32, #tpu.memory_space<vmem>>, vector<1x18xf32>
    %51 = vector.broadcast %50 : vector<1x18xf32> to vector<8x18xf32>
    %52 = arith.mulf %49, %51 : vector<8x18xf32>
    %c40_52 = arith.constant 40 : index
    %c110_53 = arith.constant 110 : index
    %53 = vector.load %arg9[%c40_52, %c110_53] : memref<72x128xf32, #tpu.memory_space<vmem>>, vector<8x18xf32>
    tpu.vector_store %arg9[%c40_52, %c110_53], %52 {strides = array<i32>} : memref<72x128xf32, #tpu.memory_space<vmem>>, vector<8x18xf32>,
    %c0_54 = arith.constant 0 : index
    %c0_55 = arith.constant 0 : index
    %c32_56 = arith.constant 32 : index
    %54 = vector.load %arg2[%c0_54, %c0_55, %c32_56] : memref<1x8x128xf32, #tpu.memory_space<vmem>>, vector<1x8x96xf32>
    %55 = vector.shape_cast %54 : vector<1x8x96xf32> to vector<8x96xf32>
    %c0_57 = arith.constant 0 : index
    %c0_58 = arith.constant 0 : index
    %56 = vector.load %arg4[%c0_57, %c0_58] : memref<3x128xf32, #tpu.memory_space<vmem>>, vector<1x96xf32>
    %57 = vector.broadcast %56 : vector<1x96xf32> to vector<8x96xf32>
    %58 = arith.mulf %55, %57 : vector<8x96xf32>
    %c48 = arith.constant 48 : index
    %c0_59 = arith.constant 0 : index
    %59 = vector.load %arg9[%c48, %c0_59] : memref<72x128xf32, #tpu.memory_space<vmem>>, vector<8x96xf32>
    tpu.vector_store %arg9[%c48, %c0_59], %58 {strides = array<i32>} : memref<72x128xf32, #tpu.memory_space<vmem>>, vector<8x96xf32>,
    %c0_60 = arith.constant 0 : index
    %c0_61 = arith.constant 0 : index
    %c0_62 = arith.constant 0 : index
    %60 = vector.load %arg3[%c0_60, %c0_61, %c0_62] : memref<1x8x128xf32, #tpu.memory_space<vmem>>, vector<1x8x32xf32>
    %61 = vector.shape_cast %60 : vector<1x8x32xf32> to vector<8x32xf32>
    %c0_63 = arith.constant 0 : index
    %c96 = arith.constant 96 : index
    %62 = vector.load %arg4[%c0_63, %c96] : memref<3x128xf32, #tpu.memory_space<vmem>>, vector<1x32xf32>
    %63 = vector.broadcast %62 : vector<1x32xf32> to vector<8x32xf32>
    %64 = arith.mulf %61, %63 : vector<8x32xf32>
    %c48_64 = arith.constant 48 : index
    %c96_65 = arith.constant 96 : index
    %65 = vector.load %arg9[%c48_64, %c96_65] : memref<72x128xf32, #tpu.memory_space<vmem>>, vector<8x32xf32>
    tpu.vector_store %arg9[%c48_64, %c96_65], %64 {strides = array<i32>} : memref<72x128xf32, #tpu.memory_space<vmem>>, vector<8x32xf32>,
    %c0_66 = arith.constant 0 : index
    %c0_67 = arith.constant 0 : index
    %c33 = arith.constant 33 : index
    %66 = vector.load %arg2[%c0_66, %c0_67, %c33] : memref<1x8x128xf32, #tpu.memory_space<vmem>>, vector<1x8x95xf32>
    %67 = vector.shape_cast %66 : vector<1x8x95xf32> to vector<8x95xf32>
    %c56 = arith.constant 56 : index
    %c0_68 = arith.constant 0 : index
    %68 = vector.load %arg9[%c56, %c0_68] : memref<72x128xf32, #tpu.memory_space<vmem>>, vector<8x95xf32>
    tpu.vector_store %arg9[%c56, %c0_68], %67 {strides = array<i32>} : memref<72x128xf32, #tpu.memory_space<vmem>>, vector<8x95xf32>,
    %c0_69 = arith.constant 0 : index
    %c0_70 = arith.constant 0 : index
    %c0_71 = arith.constant 0 : index
    %69 = vector.load %arg3[%c0_69, %c0_70, %c0_71] : memref<1x8x128xf32, #tpu.memory_space<vmem>>, vector<1x8x33xf32>
    %70 = vector.shape_cast %69 : vector<1x8x33xf32> to vector<8x33xf32>
    %c56_72 = arith.constant 56 : index
    %c95 = arith.constant 95 : index
    %71 = vector.load %arg9[%c56_72, %c95] : memref<72x128xf32, #tpu.memory_space<vmem>>, vector<8x33xf32>
    tpu.vector_store %arg9[%c56_72, %c95], %70 {strides = array<i32>} : memref<72x128xf32, #tpu.memory_space<vmem>>, vector<8x33xf32>,
    %c0_73 = arith.constant 0 : index
    %c0_74 = arith.constant 0 : index
    %c34 = arith.constant 34 : index
    %72 = vector.load %arg2[%c0_73, %c0_74, %c34] : memref<1x8x128xf32, #tpu.memory_space<vmem>>, vector<1x8x94xf32>
    %73 = vector.shape_cast %72 : vector<1x8x94xf32> to vector<8x94xf32>
    %c2_75 = arith.constant 2 : index
    %c0_76 = arith.constant 0 : index
    %74 = vector.load %arg4[%c2_75, %c0_76] : memref<3x128xf32, #tpu.memory_space<vmem>>, vector<1x94xf32>
    %75 = vector.broadcast %74 : vector<1x94xf32> to vector<8x94xf32>
    %76 = arith.mulf %73, %75 : vector<8x94xf32>
    %c64 = arith.constant 64 : index
    %c0_77 = arith.constant 0 : index
    %77 = vector.load %arg9[%c64, %c0_77] : memref<72x128xf32, #tpu.memory_space<vmem>>, vector<8x94xf32>
    tpu.vector_store %arg9[%c64, %c0_77], %76 {strides = array<i32>} : memref<72x128xf32, #tpu.memory_space<vmem>>, vector<8x94xf32>,
    %c0_78 = arith.constant 0 : index
    %c0_79 = arith.constant 0 : index
    %c0_80 = arith.constant 0 : index
    %78 = vector.load %arg3[%c0_78, %c0_79, %c0_80] : memref<1x8x128xf32, #tpu.memory_space<vmem>>, vector<1x8x34xf32>
    %79 = vector.shape_cast %78 : vector<1x8x34xf32> to vector<8x34xf32>
    %c2_81 = arith.constant 2 : index
    %c94 = arith.constant 94 : index
    %80 = vector.load %arg4[%c2_81, %c94] : memref<3x128xf32, #tpu.memory_space<vmem>>, vector<1x34xf32>
    %81 = vector.broadcast %80 : vector<1x34xf32> to vector<8x34xf32>
    %82 = arith.mulf %79, %81 : vector<8x34xf32>
    %c64_82 = arith.constant 64 : index
    %c94_83 = arith.constant 94 : index
    %83 = vector.load %arg9[%c64_82, %c94_83] : memref<72x128xf32, #tpu.memory_space<vmem>>, vector<8x34xf32>
    tpu.vector_store %arg9[%c64_82, %c94_83], %82 {strides = array<i32>} : memref<72x128xf32, #tpu.memory_space<vmem>>, vector<8x34xf32>,
    %c0_84 = arith.constant 0 : index
    %c0_85 = arith.constant 0 : index
    %84 = vector.load %arg5[%c0_84, %c0_85] : memref<16x72xf32, #tpu.memory_space<vmem>>, vector<16x72xf32>
    %c0_86 = arith.constant 0 : index
    %c0_87 = arith.constant 0 : index
    %85 = vector.load %arg9[%c0_86, %c0_87] : memref<72x128xf32, #tpu.memory_space<vmem>>, vector<72x128xf32>
    %cst = arith.constant dense<0.000000e+00> : vector<16x128xf32>
    %86 = tpu.matmul %84, %85, %cst {dimension_numbers = #tpu.dot_dimension_numbers<[1], [0], [0], [1], [0, 0, 1, 1], [], []>} : vector<16x72xf32>, vector<72x128xf32>, vector<16x128xf32> -> vector<16x128xf32>
    %87 = vector.extract_strided_slice %86 {offsets = [0, 0], sizes = [8, 128], strides = [1, 1]} : vector<16x128xf32> to vector<8x128xf32>
    %cst_88 = arith.constant dense<0xFF800000> : vector<128xf32>
    %88 = vector.multi_reduction <maximumf>, %87, %cst_88 [0] : vector<8x128xf32> to vector<128xf32>
    %89 = vector.shape_cast %88 : vector<128xf32> to vector<1x128xf32>
    %90 = vector.broadcast %89 : vector<1x128xf32> to vector<8x128xf32>
    %91 = arith.subf %87, %90 : vector<8x128xf32>
    %92 = math.exp %91 : vector<8x128xf32>
    %cst_89 = arith.constant dense<0.000000e+00> : vector<128xf32>
    %93 = vector.multi_reduction <add>, %92, %cst_89 [0] : vector<8x128xf32> to vector<128xf32>
    %94 = vector.shape_cast %93 : vector<128xf32> to vector<1x128xf32>
    %95 = tpu.reciprocal %94 {approx = true} : vector<1x128xf32> -> vector<1x128xf32>
    %96 = arith.mulf %94, %95 : vector<1x128xf32>
    %cst_90 = arith.constant 2.000000e+00 : f32
    %97 = vector.broadcast %cst_90 : f32 to vector<1x128xf32>
    %98 = arith.subf %97, %96 : vector<1x128xf32>
    %99 = arith.mulf %95, %98 : vector<1x128xf32>
    %100 = vector.broadcast %99 : vector<1x128xf32> to vector<8x128xf32>
    %101 = arith.mulf %92, %100 : vector<8x128xf32>
    %102 = vector.extract_strided_slice %86 {offsets = [8, 0], sizes = [8, 128], strides = [1, 1]} : vector<16x128xf32> to vector<8x128xf32>
    %cst_91 = arith.constant dense<0xFF800000> : vector<128xf32>
    %103 = vector.multi_reduction <maximumf>, %102, %cst_91 [0] : vector<8x128xf32> to vector<128xf32>
    %104 = vector.shape_cast %103 : vector<128xf32> to vector<1x128xf32>
    %105 = vector.broadcast %104 : vector<1x128xf32> to vector<8x128xf32>
    %106 = arith.subf %102, %105 : vector<8x128xf32>
    %107 = math.exp %106 : vector<8x128xf32>
    %cst_92 = arith.constant dense<0.000000e+00> : vector<128xf32>
    %108 = vector.multi_reduction <add>, %107, %cst_92 [0] : vector<8x128xf32> to vector<128xf32>
    %109 = vector.shape_cast %108 : vector<128xf32> to vector<1x128xf32>
    %110 = tpu.reciprocal %109 {approx = true} : vector<1x128xf32> -> vector<1x128xf32>
    %111 = arith.mulf %109, %110 : vector<1x128xf32>
    %cst_93 = arith.constant 2.000000e+00 : f32
    %112 = vector.broadcast %cst_93 : f32 to vector<1x128xf32>
    %113 = arith.subf %112, %111 : vector<1x128xf32>
    %114 = arith.mulf %110, %113 : vector<1x128xf32>
    %115 = vector.broadcast %114 : vector<1x128xf32> to vector<8x128xf32>
    %116 = arith.mulf %107, %115 : vector<8x128xf32>
    %117 = tpu.concatenate %101, %116 in 0 : vector<8x128xf32>, vector<8x128xf32> -> vector<16x128xf32>
    %c0_94 = arith.constant 0 : index
    %c0_95 = arith.constant 0 : index
    %118 = vector.load %arg6[%c0_94, %c0_95] : memref<8x16xf32, #tpu.memory_space<vmem>>, vector<8x16xf32>
    %cst_96 = arith.constant dense<0.000000e+00> : vector<8x128xf32>
    %119 = tpu.matmul %118, %117, %cst_96 {dimension_numbers = #tpu.dot_dimension_numbers<[1], [0], [0], [1], [0, 0, 1, 1], [], []>} : vector<8x16xf32>, vector<16x128xf32>, vector<8x128xf32> -> vector<8x128xf32>
    %c0_97 = arith.constant 0 : index
    %c0_98 = arith.constant 0 : index
    %120 = vector.load %arg7[%c0_97, %c0_98] : memref<8x1xf32, #tpu.memory_space<vmem>>, vector<8x1xf32>
    %121 = vector.broadcast %120 : vector<8x1xf32> to vector<8x128xf32>
    %122 = arith.addf %119, %121 : vector<8x128xf32>
    %c0_99 = arith.constant 0 : index
    %c0_100 = arith.constant 0 : index
    %c0_101 = arith.constant 0 : index
    %123 = vector.load %arg8[%c0_99, %c0_100, %c0_101] : memref<1x8x128xf32, #tpu.memory_space<vmem>>, vector<1x8x128xf32>
    %124 = vector.shape_cast %123 : vector<1x8x128xf32> to vector<8x128xf32>
    %125 = vector.shape_cast %122 : vector<8x128xf32> to vector<1x8x128xf32>
    tpu.vector_store %arg8[%c0_99, %c0_100, %c0_101], %125 {strides = array<i32>} : memref<1x8x128xf32, #tpu.memory_space<vmem>>, vector<1x8x128xf32>,
    return
  }
  func.func @transform_0(%arg0: i32, %arg1: i32) -> (i32, i32, i32) {
    %c0_i32 = arith.constant 0 : i32
    %c0_i32_0 = arith.constant 0 : i32
    return %arg0, %c0_i32, %arg1 : i32, i32, i32
  }
  func.func @transform_1(%arg0: i32, %arg1: i32) -> (i32, i32, i32) {
    %c1_i32 = arith.constant 1 : i32
    %0 = arith.addi %arg1, %c1_i32 : i32
    %c1_i32_0 = arith.constant 1 : i32
    %1 = arith.muli %0, %c1_i32_0 : i32
    %c0_i32 = arith.constant 0 : i32
    %c0_i32_1 = arith.constant 0 : i32
    return %arg0, %c0_i32, %1 : i32, i32, i32
  }
  func.func @transform_2(%arg0: i32, %arg1: i32) -> (i32, i32) {
    %c0_i32 = arith.constant 0 : i32
    %c0_i32_0 = arith.constant 0 : i32
    %c0_i32_1 = arith.constant 0 : i32
    return %c0_i32, %c0_i32_0 : i32, i32
  }
  func.func @transform_3(%arg0: i32, %arg1: i32) -> (i32, i32) {
    %c0_i32 = arith.constant 0 : i32
    %c0_i32_0 = arith.constant 0 : i32
    %c0_i32_1 = arith.constant 0 : i32
    return %c0_i32, %c0_i32_0 : i32, i32
  }
  func.func @transform_4(%arg0: i32, %arg1: i32) -> (i32, i32) {
    %c0_i32 = arith.constant 0 : i32
    %c0_i32_0 = arith.constant 0 : i32
    %c0_i32_1 = arith.constant 0 : i32
    return %c0_i32, %c0_i32_0 : i32, i32
  }
  func.func @transform_5(%arg0: i32, %arg1: i32) -> (i32, i32) {
    %c0_i32 = arith.constant 0 : i32
    %c0_i32_0 = arith.constant 0 : i32
    %c0_i32_1 = arith.constant 0 : i32
    return %c0_i32, %c0_i32_0 : i32, i32
  }
  func.func @transform_6(%arg0: i32, %arg1: i32) -> (i32, i32, i32) {
    %c0_i32 = arith.constant 0 : i32
    %c0_i32_0 = arith.constant 0 : i32
    return %arg0, %c0_i32, %arg1 : i32, i32, i32
  }
}

</mosaic_0001>

<bundles_post_ra>
// kernel: key_conv_memory_multihead.1
= control target key start
LH: loop header
LB: loop body
LE: loop exit
PB: predicated region body
PF: predicated region fallthrough
CT: control target
= control target key end

     0   :  { %s913_s21 = smov 0   ;;  %s915_s22 = smov 0   ;;  %s1034_s0 = inlined_call_operand.vmem [shape: f32[2,8,384], index: 0, kind: input, shape index: {}, may-alias: {0,1}]   ;;  %s1035_s1 = inlined_call_operand.vmem [shape: f32[2,8,384], index: 1, kind: input, shape index: {}, may-alias: {0,1}]   ;;  %s1036_s2 = inlined_call_operand.vmem [shape: f32[3,128], index: 2, kind: input, shape index: {}]   ;;  %s1037_s3 = inlined_call_operand.vmem [shape: f32[16,72], index: 3, kind: input, shape index: {}]   ;;  %s1038_s4 = inlined_call_operand.vmem [shape: f32[8,16], index: 4, kind: input, shape index: {}]   ;;  %s1039_s5 = inlined_call_operand.vmem [shape: f32[8,1], index: 5, kind: input, shape index: {}]   ;;  %s1040_s6 = inlined_call_operand.vmem [shape: f32[2,8,256], index: 6, kind: output, shape index: {}]  }
   0x1   :  { %s917_s23 = smov 0   ;;  %s919_s24 = smov 0  }
   0x2   :  { %s921_s25 = smov 0  }
   0x3 LB: > { %s25_s26 = sadd.s32 1, %s854_s23  ;;  %s28_s27 = sadd.s32 1, %s858_s24  ;;  %s862_s25 = sphi %s921_s25, %s16_s25   ;;  %s858_s24 = sphi %s919_s24, %s1044_s24   ;;  %s854_s23 = sphi %s917_s23, %s1043_s23   ;;  %s850_s22 = sphi %s915_s22, %s1042_s22   ;;  %s846_s21 = sphi %s913_s21, %s1041_s21  }
   0x4   : > { %p26_p0 = scmp.ge.s32.totalorder %s25_s26, 2  ;;  %p729_p1 = scmp.ge.s32.totalorder %s862_s25, 1 }
   0x5   : > { %p250_p2 = scmp.lt.s32.totalorder %s862_s25, 5 }
   0x6   : > { %s1046_s26 = smov (%p26_p0, %s25_s26), 0  ;;  %s1048_s27 = smov (!%p26_p0, %s28_s27), %s858_s24 }
   0x7   : > { %p251_p3 = pnand %p729_p1, %p250_p2  ;;  %p30_p4 = scmp.ge.s32.totalorder %s1048_s27, 2 }
   0x8   : > { %s864_s8 = smov (!%p251_p3), 34   ;;  %s865_s9 = smov (!%p251_p3), 32  }
   0x9   : > { %s1050_s27 = smov (%p30_p4, %s1048_s27), 0  ;;  %254 = sbr.rel (%p251_p3) target bundleno = 598 (0x256), region = 44 }
   0xa   : > { %s866_s14 = smov (!%p251_p3), 18   ;;  %p295_p5 = scmp.lt.s32.totalorder (!%p251_p3), %s850_s22, 1 }
   0xb   : > { %s303_s17 = sadd.s32 (!%p251_p3), 1, %s846_s21  ;;  %p297_p7 = scmp.lt.s32.totalorder (!%p251_p3), %s846_s21, 2 }
   0xc   : > { %p306_p6 = scmp.lt.s32.totalorder (!%p251_p3), %s303_s17, 2  ;;  %s867_s11 = smov (!%p251_p3), 16  }
   0xd   : > { %s868_s18 = smov (!%p251_p3), 2   ;;  %s869_s30 = smov (!%p251_p3), 95  }
   0xe   : > { %v805_v0 = vld [vmem:[%s1036_s2 + $0x2] ss:$0 sm:$0xff]  ;;  %v806_v1 = vld [vmem:[%s1036_s2] ss:$0 sm:$0xff]  ;;  %s1052_s22 = smov (!%p295_p5, %s850_s22), 1  ;;  %s1054_s17 = smov (!%p306_p6, %s303_s17), 2 }
   0xf   : > { %484 = vrot.lane.b32.xlu0 %v805_v0, %s864_s8  ;;  %442 = vrot.lane.b32.xlu1 %v806_v1, %s865_s9  ;;  %v810_v2 = vld [vmem:[%s1036_s2 + $0x2] ss:$0 sm:$0xff]  ;;  %v808_v4 = vld [vmem:[%s1036_s2] ss:$0 sm:$0xff]  ;;  %s748_s20 = smul.u32 3, %s1052_s22  ;;  %s873_s13 = smov 96  }
  0x10   : > { %v807_v3 = vld [vmem:[%s1036_s2 + $0x2] ss:$0 sm:$0xff]  ;;  %414 = vrot.lane.b32.xlu2 %v810_v2, %s866_s14  ;;  %v812_v6 = vld [vmem:[%s1036_s2] ss:$0 sm:$0xff]  ;;  %s875_s15 = smov 112   ;;  %vm471_vm0 = vcmask 777216  }
  0x11   : > { %v811_v5 = vld [vmem:[%s1036_s2 + $0x2] ss:$0 sm:$0xff]  ;;  %v809_v7 = vld [vmem:[%s1036_s2] ss:$0 sm:$0xff]  ;;  %s309_s10 = sadd.s32 %s748_s20, %s1054_s17  ;;  %vm478_vm1 = vcmask 1048312   ;;  %vm401_vm2 = vcmask 908288  }
  0x12   : > { %v813_v8 = vld [vmem:[%s1036_s2 + $0x2] ss:$0 sm:$0xff]  ;;  %vm408_vm3 = vcmask 1048440   ;;  %vm450_vm4 = vcmask 785408   ;;  %vm492_vm5 = vcmask 769024   ;;  %vm506_vm6 = vcmask 1048304  }
  0x13   : > { %v814_v9 = vld [vmem:[%s1036_s2 + $0x2] ss:$0 sm:$0xff]  ;;  %v815_v40 = vld [vmem:[%s1036_s2] ss:$0 sm:$0xff]  ;;  %vm422_vm7 = vcmask 900096   ;;  %vm436_vm8 = vcmask 1048432  }
  0x14   : > { %vm464_vm9 = vcmask 1048320   ;;  %vm380_vm10 = vcmask 916480   ;;  %vm352_vm11 = vcmask 1031168   ;;  %vm394_vm12 = vcmask 1048448   ;;  %v508_v58 = vld [vmem:[%s1037_s3] sm:$0xff]  ;;  %v509_v59 = vld [vmem:[%s1037_s3 + $0x8] sm:$0xff] }
  0x15   : > { %vm366_vm13 = vcmask 1048560   ;;  %vm331_vm14 = vcmask 1039360   ;;  %vm338_vm15 = vcmask 1048568   ;;  %p315_p8 = scmp.lt.s32.totalorder %s846_s21, 1 }
  0x17   : > { %498 = vrot.lane.b32.xlu0 %v807_v3, %s864_s8  ;;  %456 = vrot.lane.b32.xlu1 %v808_v4, %s865_s9  ;;  %s298_s8 = scalar_select %p297_p7, %s846_s21, 2 }
  0x18   : > { %428 = vrot.lane.b32.xlu2 %v811_v5, %s866_s14  ;;  %s731_s9 = sshll.u32 %s309_s10, 3  ;;  %s876_s14 = smov 127  }
  0x19   : > { %s311_s16 = scalar_lea.vmem %s1035_s1, %s731_s9  ;;  %s300_s17 = sadd.s32 %s748_s20, %s298_s8 }
  0x1a   : > { %v473_v10 = vld [vmem:[%s311_s16] sm:$0xff]  ;;  %s730_s29 = sshll.u32 %s300_s17, 3  ;;  %s871_s20 = smov 94  }
  0x1b   : > { %s302_s10 = scalar_lea.vmem %s1034_s0, %s730_s29  ;;  %s872_s8 = smov 110  }
  0x1c   : > { %v987_v11 = vld [vmem:[%s302_s10] sm:$0xff]  ;;  %s874_s9 = smov 126   ;;  %s1056_s21 = smov (!%p315_p8, %s846_s21), 1 }
  0x1d   : > { %v324_v41 = vmul.f32 %v815_v40, %v987_v11  ;;  %v589_v40 = vld [vmem:[%s1038_s4] sm:$0xff] }
  0x1f   : > { %372 = vrot.lane.b32.xlu0 %v812_v6, %s867_s11  ;;  %386 = vrot.lane.b32.xlu1 %v809_v7, %s867_s11  ;;  %s870_s11 = smov 111  }
  0x20   : > { %344 = vrot.lane.b32.xlu2 %v813_v8, %s868_s18 }
  0x27   : > { %358 = vrot.lane.b32.xlu0 %v814_v9, %s868_s18  ;;  %475 = vrot.lane.b32.xlu1 %v473_v10, %s869_s30 }
  0x2f   : > { %468 = vrot.lane.b32.xlu0 %v987_v11, %s869_s30  ;;  %405 = vrot.lane.b32.xlu1 %v473_v10, %s870_s11 }
  0x37   : > { %398 = vrot.lane.b32.xlu0 %v987_v11, %s870_s11  ;;  %s732_s11 = sshll.u32 %s1052_s22, 1 }
  0x6a   : > { %v415_v12 = vpop.permute.xlu2 %414 }
  0x6b   : > { %v417_v18 = vmul.f32 %v987_v11, %v415_v12 }
  0x72   : > { %v429_v16 = vpop.permute.xlu2 %428 }
  0x73   : > { %v431_v27 = vmul.f32 %v473_v10, %v429_v16 }
  0x7a   : > { %v345_v22 = vpop.permute.xlu2 %344 }
  0x7b   : > { %v347_v23 = vmul.f32 %v987_v11, %v345_v22 }
  0x81   : > { %v485_v13 = vpop.permute.xlu0 %484  ;;  %v443_v15 = vpop.permute.xlu1 %442 }
  0x82   : > { %v487_v14 = vmul.f32 %v485_v13, %v987_v11  ;;  %v445_v24 = vmul.f32 %v987_v11, %v443_v15 }
  0x84   : > { %489 = vrot.lane.b32.xlu1 %v487_v14, %s871_s20 }
  0x89   : > { %v499_v17 = vpop.permute.xlu0 %498  ;;  %v457_v20 = vpop.permute.xlu1 %456 }
  0x8a   : > { %v501_v19 = vmul.f32 %v499_v17, %v473_v10  ;;  %v459_v21 = vmul.f32 %v473_v10, %v457_v20  ;;  %v877_v20 = vmov 0  }
  0x8b   : > { %803 = vset.pattern.permute.xlu2 %v877_v20  ;;  %804 = vset.pattern.permute.xlu0 %v877_v20 }
  0x8c   : > { %503 = vrot.lane.b32.xlu2 %v501_v19, %s871_s20  ;;  %419 = vrot.lane.b32.xlu1 %v417_v18, %s872_s8  ;;  %v590_v18 = vld [vmem:[%s1039_s5] sm:$0xff]  ;;  %s318_s20 = sadd.s32 %s732_s11, %s1056_s21 }
  0x8d   : > { %461 = vrot.lane.b32.xlu0 %v459_v21, %s873_s13 }
  0x91   : > { %v387_v25 = vpop.permute.xlu1 %386  ;;  %v373_v28 = vpop.permute.xlu0 %372 }
  0x92   : > { %v389_v26 = vmul.f32 %v473_v10, %v387_v25  ;;  %v375_v29 = vmul.f32 %v987_v11, %v373_v28 }
  0x94   : > { %447 = vrot.lane.b32.xlu2 %v445_v24, %s873_s13  ;;  %349 = vrot.lane.b32.xlu1 %v347_v23, %s874_s9 }
  0x95   : > { %391 = vrot.lane.b32.xlu0 %v389_v26, %s875_s15 }
  0x99   : > { %v359_v30 = vpop.permute.xlu0 %358  ;;  %v476_v32 = vpop.permute.xlu1 %475 }
  0x9a   : > { %v361_v31 = vmul.f32 %v473_v10, %v359_v30 }
  0x9c   : > { %433 = vrot.lane.b32.xlu2 %v431_v27, %s872_s8  ;;  %335 = vrot.lane.b32.xlu1 %v473_v10, %s876_s14  ;;  %s733_s8 = sshll.u32 %s318_s20, 3 }
  0x9d   : > { %328 = vrot.lane.b32.xlu0 %v987_v11, %s876_s14 }
  0xa1   : > { %v469_v33 = vpop.permute.xlu0 %468  ;;  %v406_v34 = vpop.permute.xlu1 %405 }
  0xa2   : > { %472 = vst.msk [vmem:[#allocation2 + $0x38] sm:$0xff] %vm471_vm0, %v469_v33  ;;  %vm519_vm0 = vcmask 588800  }
  0xa3   : > { %479 = vst.msk [vmem:[#allocation2 + $0x38] sm:$0xff] %vm478_vm1, %v476_v32  ;;  %vm596_vm1 = vcmask 130048  }
  0xa4   : > { %377 = vrot.lane.b32.xlu2 %v375_v29, %s875_s15  ;;  %s320_s15 = scalar_lea.vmem %s1040_s6, %s733_s8 }
  0xa9   : > { %v399_v35 = vpop.permute.xlu0 %398 }
  0xaa   : > { %402 = vst.msk [vmem:[#allocation2 + $0x20] sm:$0xff] %vm401_vm2, %v399_v35  ;;  %v517_v46 = vld [vmem:[#allocation2 + $0x38] sm:$0xff] }
  0xab   : > { %409 = vst.msk [vmem:[#allocation2 + $0x20] sm:$0xff] %vm408_vm3, %v406_v34 }
  0xac   : > { %363 = vrot.lane.b32.xlu2 %v361_v31, %s874_s9 }
  0xb2   : > { %v514_v52 = vld [vmem:[#allocation2 + $0x20] sm:$0xff] }
  0xb4   : > { %593 = vperm.xlu2 %803, %v590_v18  }
  0xe6   : > { %v504_v36 = vpop.permute.xlu2 %503 }
  0xee   : > { %v448_v37 = vpop.permute.xlu2 %447 }
  0xef   : > { %451 = vst.msk [vmem:[#allocation2 + $0x30] sm:$0xff] %vm450_vm4, %v448_v37 }
  0xf6   : > { %v490_v38 = vpop.permute.xlu1 %489  ;;  %v434_v39 = vpop.permute.xlu2 %433 }
  0xf7   : > { %493 = vst.msk [vmem:[#allocation2 + $0x40] sm:$0xff] %vm492_vm5, %v490_v38 }
  0xf8   : > { %507 = vst.msk [vmem:[#allocation2 + $0x40] sm:$0xff] %vm506_vm6, %v504_v36 }
  0xfe   : > { %v420_v42 = vpop.permute.xlu1 %419  ;;  %v378_v43 = vpop.permute.xlu2 %377 }
  0xff   : > { %423 = vst.msk [vmem:[#allocation2 + $0x28] sm:$0xff] %vm422_vm7, %v420_v42  ;;  %v462_v44 = vpop.permute.xlu0 %461  ;;  %v518_v45 = vld [vmem:[#allocation2 + $0x40] sm:$0xff] }
 0x100   : > { %437 = vst.msk [vmem:[#allocation2 + $0x28] sm:$0xff] %vm436_vm8, %v434_v39  ;;  %533 = vmatpush.msra.mxu0 %v518_v45  ;;  %739 = vmatpush.msra.mxu2 %v518_v45 }
 0x101   : > { %465 = vst.msk [vmem:[#allocation2 + $0x30] sm:$0xff] %vm464_vm9, %v462_v44 }
 0x102   : > { %534 = vmatpush.msra.mxu0 %v517_v46  ;;  %740 = vmatpush.msra.mxu2 %v517_v46  ;;  %381 = vst.msk [vmem:[#allocation2 + $0x18] sm:$0xff] %vm380_vm10, %v378_v43 }
 0x106   : > { %v350_v47 = vpop.permute.xlu1 %349  ;;  %v364_v48 = vpop.permute.xlu2 %363 }
 0x107   : > { %v392_v49 = vpop.permute.xlu0 %391  ;;  %353 = vst.msk [vmem:[#allocation2 + $0x10] sm:$0xff] %vm352_vm11, %v350_v47  ;;  %v515_v51 = vld [vmem:[#allocation2 + $0x28] sm:$0xff] }
 0x108   : > { %395 = vst.msk [vmem:[#allocation2 + $0x18] sm:$0xff] %vm394_vm12, %v392_v49  ;;  %v516_v50 = vld [vmem:[#allocation2 + $0x30] sm:$0xff] }
 0x109   : > { %535 = vmatpush.msra.mxu0 %v516_v50  ;;  %741 = vmatpush.msra.mxu2 %v516_v50  ;;  %367 = vst.msk [vmem:[#allocation2 + $0x10] sm:$0xff] %vm366_vm13, %v364_v48 }
 0x10b   : > { %536 = vmatpush.msra.mxu0 %v515_v51  ;;  %742 = vmatpush.msra.mxu2 %v515_v51 }
 0x10d   : > { %537 = vmatpush.msra.mxu0 %v514_v52  ;;  %743 = vmatpush.msra.mxu2 %v514_v52 }
 0x10e   : > { %v336_v53 = vpop.permute.xlu1 %335 }
 0x10f   : > { %v329_v54 = vpop.permute.xlu0 %328  ;;  %v513_v55 = vld [vmem:[#allocation2 + $0x18] sm:$0xff] }
 0x110   : > { %332 = vst.msk [vmem:[#allocation2 + $0x8] sm:$0xff] %vm331_vm14, %v329_v54  ;;  %538 = vmatpush.msra.mxu0 %v513_v55  ;;  %744 = vmatpush.msra.mxu2 %v513_v55  ;;  %v512_v56 = vld [vmem:[#allocation2 + $0x10] sm:$0xff] }
 0x111   : > { %339 = vst.msk [vmem:[#allocation2 + $0x8] sm:$0xff] %vm338_vm15, %v336_v53 }
 0x112   : > { %539 = vmatpush.msra.mxu0 %v512_v56  ;;  %745 = vmatpush.msra.mxu2 %v512_v56 }
 0x118   : > { %v511_v57 = vld [vmem:[#allocation2 + $0x8] sm:$0xff] }
 0x119   : > { %540 = vmatpush.msra.mxu0 %v511_v57  ;;  %746 = vmatpush.msra.mxu2 %v511_v57 }
 0x11b   : > { %541 = vmatpush.msra.mxu0 %v324_v41  ;;  %747 = vmatpush.msra.mxu2 %v324_v41  ;;  %v594_v41 = vpop.permute.xlu2 %593 }
 0x11c   : > { %734 = vmatmul.msk.f32.vlgmr.msra.gmra.mxu0 %vm519_vm0, %v508_v58  ;;  %735 = vmatmul.msk.f32.vlgmr.msra.gmra.mxu2 %vm519_vm0, %v509_v59 }
 0x199   : > { %v543_v60 = vpop.f32.mrf.mxu0 }
 0x19a   : > { %v549_v61 = vrot.slane %v543_v60, 4 }
 0x19c   : > { %v550_v62 = vmax.f32 %v543_v60, %v549_v61 }
 0x19e   : > { %v551_v63 = vrot.slane %v550_v62, 2 }
 0x19f   : > { %v546_v0 = vpop.f32.mrf.mxu2 }
 0x1a0   : > { %v552_v1 = vmax.f32 %v550_v62, %v551_v63  ;;  %v569_v2 = vrot.slane %v546_v0, 4 }
 0x1a2   : > { %v553_v3 = vrot.slane %v552_v1, 1  ;;  %v570_v4 = vmax.f32 %v546_v0, %v569_v2 }
 0x1a4   : > { %v554_v5 = vmax.f32 %v552_v1, %v553_v3  ;;  %v571_v6 = vrot.slane %v570_v4, 2 }
 0x1a6   : > { %v555_v7 = vsub.f32 %v543_v60, %v554_v5  ;;  %v572_v8 = vmax.f32 %v570_v4, %v571_v6 }
 0x1a8   : > { %v556_v9 = vmul.f32 1.442695, %v555_v7  ;;  %v573_v10 = vrot.slane %v572_v8, 1 }
 0x1aa   : > { %816 = vpow2.f32 %v556_v9  ;;  %v574_v11 = vmax.f32 %v572_v8, %v573_v10 }
 0x1ac   : > { %v575_v12 = vsub.f32 %v546_v0, %v574_v11 }
 0x1ae   : > { %v576_v13 = vmul.f32 1.442695, %v575_v12 }
 0x1b0   : > { %v817_v14 = vpop.eup %816  ;;  %818 = vpow2.f32 %v576_v13 }
 0x1b1   : > { %v558_v15 = vrot.slane %v817_v14, 4 }
 0x1b3   : > { %v559_v16 = vadd.f32 %v817_v14, %v558_v15 }
 0x1b5   : > { %v560_v17 = vrot.slane %v559_v16, 2 }
 0x1b6   : > { %v819_v19 = vpop.eup %818 }
 0x1b7   : > { %v578_v21 = vrot.slane %v819_v19, 4  ;;  %v561_v22 = vadd.f32 %v560_v17, %v559_v16 }
 0x1b9   : > { %v579_v23 = vadd.f32 %v819_v19, %v578_v21  ;;  %v562_v24 = vrot.slane %v561_v22, 1 }
 0x1bb   : > { %v580_v25 = vrot.slane %v579_v23, 2  ;;  %v563_v26 = vadd.f32 %v562_v24, %v561_v22 }
 0x1bd   : > { %v581_v27 = vadd.f32 %v580_v25, %v579_v23  ;;  %820 = vrcp.f32 %v563_v26 }
 0x1bf   : > { %v582_v28 = vrot.slane %v581_v27, 1 }
 0x1c1   : > { %v583_v29 = vadd.f32 %v582_v28, %v581_v27 }
 0x1c3   : > { %v821_v30 = vpop.eup %820  ;;  %822 = vrcp.f32 %v583_v29 }
 0x1c4   : > { %v565_v31 = vmul.f32 %v821_v30, %v563_v26 }
 0x1c6   : > { %v566_v34 = vsub.f32 2.0, %v565_v31 }
 0x1c8   : > { %v567_v37 = vmul.f32 %v821_v30, %v566_v34 }
 0x1c9   : > { %v823_v32 = vpop.eup %822 }
 0x1ca   : > { %v585_v33 = vmul.f32 %v823_v32, %v583_v29  ;;  %v568_v39 = vmul.f32 %v817_v14, %v567_v37 }
 0x1cc   : > { %v586_v35 = vsub.f32 2.0, %v585_v33 }
 0x1ce   : > { %v587_v36 = vmul.f32 %v823_v32, %v586_v35 }
 0x1d0   : > { %v588_v38 = vmul.f32 %v819_v19, %v587_v36 }
 0x1d2   : > { %614 = vmatpush.msra.mxu1 %v588_v38 }
 0x1d4   : > { %615 = vmatpush.msra.mxu1 %v568_v39 }
 0x1d5   : > { %736 = vmatmul.msk.f32.vlgmr.msra.gmra.mxu1 %vm596_vm1, %v589_v40 }
 0x252   : > { %v617_v42 = vpop.f32.mrf.mxu1 }
 0x253   : > { %v618_v43 = vadd.f32 %v617_v42, %v594_v41 }
 0x255   : > { %620 = vst [vmem:[%s320_s15] sm:$0xff] %v618_v43 }
 0x256 PF: > { %s16_s25 = sadd.s32 1, %s862_s25   ;;  %s1041_s21 = smov %s854_s23 }
 0x257   : > { %p13_p9 = scmp.ge.s32.totalorder %s16_s25, 6   ;;  %s1042_s22 = smov %s858_s24 }
 0x258   : > { %s1043_s23 = smov %s1046_s26  ;;  %s1044_s24 = smov %s1050_s27 }
 0x259   :  { %15 = sbr.rel (!%p13_p9) target bundleno = 3 (0x3), region = 77 }

</bundles_post_ra>
